<compile_context>
chip_gen: v7x
topology: tpu7x:2x2x1
jax: 0.10.0
libtpu: 0.0.40
codegen_flags: <defaults>
</compile_context>

<pallas_src>
import numpy as np
import jax
import jax.numpy as jnp
from jax.experimental import pallas as pl
from jax.experimental.pallas import tpu as pltpu


# ----------------------------- Pallas kernel --------------------------------
def _cem_kernel(x4_ref, x5_ref, cg_ref,
                w4t_ref, b4_ref, w5t_ref, b5_ref, u_ref,
                o_ref):
    x4 = x4_ref[0]                                     # (C4in, TP4)
    x5 = x5_ref[0]                                     # (C5in, TP5)

    # C4 lateral: 1x1 conv (channels contracted on the MXU) + bias + ReLU.
    c4 = jnp.dot(w4t_ref[...], x4, preferred_element_type=jnp.float32)
    c4 = jnp.maximum(c4 + b4_ref[...], 0.0)            # (Cout, TP4)

    # C5 lateral at LOW resolution, then nearest-2x upsample via the resident
    # 0/1 selection matrix U (exact: each U column copies one low-res pixel,
    # so ReLU/bias commute with it and no precision is lost).
    c5 = jnp.dot(w5t_ref[...], x5, preferred_element_type=jnp.float32)
    c5 = jnp.maximum(c5 + b5_ref[...], 0.0)            # (Cout, TP5)
    c5u = jnp.dot(c5, u_ref[...], preferred_element_type=jnp.float32)  # (Cout, TP4)

    # Global-context vector (precomputed per image) broadcast over all pixels.
    o_ref[0] = (c4 + c5u + cg_ref[0]).astype(o_ref.dtype)


# ----------------------------- helpers ---------------------------------------
def _pick_tile_rows5(H5, W5, target_lanes=1024):
    """Number of low-res (x5) rows per pixel tile.

    Each low-res row maps to two full high-res rows (4*W5 high-res pixels),
    so tiles built from whole low-res rows stay contiguous in the flattened
    (C, H*W) layout for BOTH resolutions.  A tile is legal if its lane widths
    are multiples of 128 or cover the full image.  Pick the largest legal tile
    under `target_lanes` high-res lanes (bigger tiles amortise the per-step
    pipeline overhead; the cap bounds the upsample-matmul MXU work so the
    kernel stays HBM-bound).
    """
    def legal(r):
        tp5, tp4 = r * W5, 4 * r * W5
        return ((tp4 % 128 == 0 or r == H5) and (tp5 % 128 == 0 or r == H5))

    divisors = [r for r in range(1, H5 + 1) if H5 % r == 0]
    valid = [r for r in divisors if legal(r)]
    if not valid:
        return H5                                        # whole image (full-dim blocks always legal)
    within = [r for r in valid if 4 * r * W5 <= target_lanes]
    if within:
        return max(within)                               # largest tile under the lane budget
    return min(valid)                                    # else smallest legal tile (bounds VMEM)


def _nearest2x_matrix(rows5, W5):
    """(TP5, TP4) 0/1 matrix: c5_up_flat = c5_flat @ U  (exact nearest 2x upsample)."""
    W4 = 2 * W5
    tp5 = rows5 * W5
    tp4 = rows5 * 2 * W4
    u = np.zeros((tp5, tp4), np.float32)
    p5 = np.arange(tp5)
    h5, w5 = p5 // W5, p5 % W5
    for dh in (0, 1):
        for dw in (0, 1):
            u[p5, (2 * h5 + dh) * W4 + 2 * w5 + dw] = 1.0
    return jnp.asarray(u)


# ----------------------------- wrapper ----------------------------------------
def cem_forward(inputs, params, *, target_lanes=1024):
    """inputs = (x4, x5) in NCHW; returns tuple with one NCHW output."""
    x4_nchw, x5_nchw = inputs
    N, C4in, H4, W4 = x4_nchw.shape
    _, C5in, H5, W5 = x5_nchw.shape
    assert H4 == 2 * H5 and W4 == 2 * W5

    w4, b4, w5, b5, wg, bg = params
    Cout = w4.shape[1]
    P4, P5 = H4 * W4, H5 * W5

    # Native NCHW, flattened: channels on sublanes, pixels on lanes (free reshape).
    x4 = x4_nchw.reshape(N, C4in, P4)
    x5 = x5_nchw.reshape(N, C5in, P5)

    # Global-context branch (tiny): GAP -> 1x1 conv -> ReLU, in plain JAX.
    gap = jnp.mean(x5, axis=-1)                                  # (N, C5in)
    cg = jax.nn.relu(gap @ wg + bg).reshape(N, Cout, 1)          # (N, Cout, 1)

    # Weights / biases shaped for (Cout, P) = wT @ (Cin, P) + b.
    w4t = jnp.transpose(w4)                                      # (Cout, C4in)
    w5t = jnp.transpose(w5)                                      # (Cout, C5in)
    b4c = b4.reshape(Cout, 1)
    b5c = b5.reshape(Cout, 1)

    # Pixel tiling along whole low-res rows (keeps both resolutions contiguous).
    r5 = _pick_tile_rows5(H5, W5, target_lanes)
    TP5 = r5 * W5
    TP4 = 4 * TP5
    n_tiles = P4 // TP4
    U = _nearest2x_matrix(r5, W5)                                # (TP5, TP4)

    # Advisory cost hint for XLA's scheduler around the custom call.
    flops = 2 * N * Cout * (C4in * P4 + C5in * P5 + TP5 * P4) + 3 * N * Cout * P4
    bytes_accessed = 4 * (N * (C4in * P4 + C5in * P5 + Cout * P4 + Cout)
                          + Cout * (C4in + C5in + 2) + TP5 * TP4)
    cost = pl.CostEstimate(flops=flops, transcendentals=0,
                           bytes_accessed=bytes_accessed)

    out = pl.pallas_call(
        _cem_kernel,
        out_shape=jax.ShapeDtypeStruct((N, Cout, P4), x4_nchw.dtype),
        grid_spec=pltpu.PrefetchScalarGridSpec(
            num_scalar_prefetch=0,
            grid=(N, n_tiles),
            in_specs=[
                pl.BlockSpec((1, C4in, TP4), lambda b, t: (b, 0, t)),   # x4 tile
                pl.BlockSpec((1, C5in, TP5), lambda b, t: (b, 0, t)),   # x5 tile (low res)
                pl.BlockSpec((1, Cout, 1), lambda b, t: (b, 0, 0)),     # global vector
                pl.BlockSpec((Cout, C4in), lambda b, t: (0, 0)),        # w4^T (resident)
                pl.BlockSpec((Cout, 1), lambda b, t: (0, 0)),           # b4
                pl.BlockSpec((Cout, C5in), lambda b, t: (0, 0)),        # w5^T
                pl.BlockSpec((Cout, 1), lambda b, t: (0, 0)),           # b5
                pl.BlockSpec((TP5, TP4), lambda b, t: (0, 0)),          # upsample matrix
            ],
            out_specs=pl.BlockSpec((1, Cout, TP4), lambda b, t: (b, 0, t)),
        ),
        compiler_params=pltpu.CompilerParams(
            dimension_semantics=("parallel", "parallel"),
            vmem_limit_bytes=32 * 1024 * 1024,   # explicit; safe on v5e/v6e/v7x, tiles sized well under
        ),
        cost_estimate=cost,
    )(x4, x5, cg, w4t, b4c, w5t, b5c, U)

    # Output is already NCHW-ordered; just unflatten the pixel axis.
    return (out.reshape(N, Cout, H4, W4),)


# ---------------- deterministic parameter init (xavier uniform, bias=0) ------
def xavier_uniform(key, cin, cout):
    # 1x1 conv: fan_in = cin, fan_out = cout, gain = 1 (mmcv xavier_init uniform)
    a = (6.0 / (cin + cout)) ** 0.5
    return jax.random.uniform(key, (cin, cout), jnp.float32, -a, a)


# ---------------- pure-JAX reference (NCHW, mirrors the PyTorch code) --------
def cem_ref(inputs, params):
    x4, x5 = inputs
    w4, b4, w5, b5, wg, bg = params

    def conv1x1(x, w, b):
        return jnp.einsum('nchw,co->nohw', x, w) + b[None, :, None, None]

    c4 = jax.nn.relu(conv1x1(x4, w4, b4))
    c5 = jax.nn.relu(conv1x1(x5, w5, b5))
    c5 = jnp.repeat(jnp.repeat(c5, 2, axis=2), 2, axis=3)          # nearest 2x
    gap = jnp.mean(x5, axis=(2, 3), keepdims=True)                 # adaptive avg pool 1
    cg = jax.nn.relu(conv1x1(gap, wg, bg))
    return c4 + c5 + cg


if __name__ == "__main__":
    key = jax.random.PRNGKey(0)
    k1, k2, k3, k4, k5 = jax.random.split(key, 5)

    N = 2
    in_channels = (8, 16)       # [C4 channels, C5 channels]
    out_channels = 16
    H5 = W5 = 8
    H4, W4 = 2 * H5, 2 * W5

    x4 = jax.random.normal(k1, (N, in_channels[0], H4, W4), jnp.float32)
    x5 = jax.random.normal(k2, (N, in_channels[1], H5, W5), jnp.float32)

    w4 = xavier_uniform(k3, in_channels[0], out_channels)
    w5 = xavier_uniform(k4, in_channels[1], out_channels)
    wg = xavier_uniform(k5, in_channels[1], out_channels)
    b4 = jnp.zeros((out_channels,), jnp.float32)   # mmcv xavier_init sets bias=0
    b5 = jnp.zeros((out_channels,), jnp.float32)
    bg = jnp.zeros((out_channels,), jnp.float32)
    params = (w4, b4, w5, b5, wg, bg)

    (out,) = cem_forward((x4, x5), params)
    out = jax.block_until_ready(out)

    ref = cem_ref((x4, x5), params)
    assert out.shape == (N, out_channels, H4, W4)
    np.testing.assert_allclose(np.asarray(out), np.asarray(ref), rtol=1e-5, atol=1e-5)
    print("KERNEL_OK")
</pallas_src>

<mosaic_0001>
module attributes {stable_mosaic.version = 11 : i64} {
  func.func @_cem_kernel(%arg0: i32, %arg1: i32, %arg2: memref<1x8x256xf32, #tpu.memory_space<vmem>>, %arg3: memref<1x16x64xf32, #tpu.memory_space<vmem>>, %arg4: memref<1x16x1xf32, #tpu.memory_space<vmem>>, %arg5: memref<16x8xf32, #tpu.memory_space<vmem>>, %arg6: memref<16x1xf32, #tpu.memory_space<vmem>>, %arg7: memref<16x16xf32, #tpu.memory_space<vmem>>, %arg8: memref<16x1xf32, #tpu.memory_space<vmem>>, %arg9: memref<64x256xf32, #tpu.memory_space<vmem>>, %arg10: memref<1x16x256xf32, #tpu.memory_space<vmem>>) attributes {dimension_semantics = [#tpu.dimension_semantics<parallel>, #tpu.dimension_semantics<parallel>], iteration_bounds = array<i64: 2, 1>, scalar_prefetch = 0 : i64, scratch_operands = 0 : i64, tpu.core_type = #tpu.core_type<tc>, window_params = [{transform_indices = @transform_0, window_bounds = array<i64: 1, 8, 256>}, {transform_indices = @transform_1, window_bounds = array<i64: 1, 16, 64>}, {transform_indices = @transform_2, window_bounds = array<i64: 1, 16, 1>}, {pipeline_mode = #tpu.pipeline_mode<synchronous>, transform_indices = @transform_3, window_bounds = array<i64: 16, 8>}, {pipeline_mode = #tpu.pipeline_mode<synchronous>, transform_indices = @transform_4, window_bounds = array<i64: 16, 1>}, {pipeline_mode = #tpu.pipeline_mode<synchronous>, transform_indices = @transform_5, window_bounds = array<i64: 16, 16>}, {pipeline_mode = #tpu.pipeline_mode<synchronous>, transform_indices = @transform_6, window_bounds = array<i64: 16, 1>}, {pipeline_mode = #tpu.pipeline_mode<synchronous>, transform_indices = @transform_7, window_bounds = array<i64: 64, 256>}, {transform_indices = @transform_8, window_bounds = array<i64: 1, 16, 256>}]} {
    %c0 = arith.constant 0 : index
    %c0_0 = arith.constant 0 : index
    %c0_1 = arith.constant 0 : index
    %0 = vector.load %arg2[%c0, %c0_0, %c0_1] : memref<1x8x256xf32, #tpu.memory_space<vmem>>, vector<1x8x256xf32>
    %1 = vector.shape_cast %0 : vector<1x8x256xf32> to vector<8x256xf32>
    %c0_2 = arith.constant 0 : index
    %c0_3 = arith.constant 0 : index
    %c0_4 = arith.constant 0 : index
    %2 = vector.load %arg3[%c0_2, %c0_3, %c0_4] : memref<1x16x64xf32, #tpu.memory_space<vmem>>, vector<1x16x64xf32>
    %3 = vector.shape_cast %2 : vector<1x16x64xf32> to vector<16x64xf32>
    %c0_5 = arith.constant 0 : index
    %c0_6 = arith.constant 0 : index
    %4 = vector.load %arg5[%c0_5, %c0_6] : memref<16x8xf32, #tpu.memory_space<vmem>>, vector<16x8xf32>
    %cst = arith.constant dense<0.000000e+00> : vector<16x256xf32>
    %5 = tpu.matmul %4, %1, %cst {dimension_numbers = #tpu.dot_dimension_numbers<[1], [0], [0], [1], [0, 0, 1, 1], [], []>} : vector<16x8xf32>, vector<8x256xf32>, vector<16x256xf32> -> vector<16x256xf32>
    %c0_7 = arith.constant 0 : index
    %c0_8 = arith.constant 0 : index
    %6 = vector.load %arg6[%c0_7, %c0_8] : memref<16x1xf32, #tpu.memory_space<vmem>>, vector<16x1xf32>
    %7 = vector.broadcast %6 : vector<16x1xf32> to vector<16x256xf32>
    %8 = arith.addf %5, %7 : vector<16x256xf32>
    %cst_9 = arith.constant 0.000000e+00 : f32
    %9 = vector.broadcast %cst_9 : f32 to vector<16x256xf32>
    %10 = arith.maximumf %8, %9 : vector<16x256xf32>
    %c0_10 = arith.constant 0 : index
    %c0_11 = arith.constant 0 : index
    %11 = vector.load %arg7[%c0_10, %c0_11] : memref<16x16xf32, #tpu.memory_space<vmem>>, vector<16x16xf32>
    %cst_12 = arith.constant dense<0.000000e+00> : vector<16x64xf32>
    %12 = tpu.matmul %11, %3, %cst_12 {dimension_numbers = #tpu.dot_dimension_numbers<[1], [0], [0], [1], [0, 0, 1, 1], [], []>} : vector<16x16xf32>, vector<16x64xf32>, vector<16x64xf32> -> vector<16x64xf32>
    %c0_13 = arith.constant 0 : index
    %c0_14 = arith.constant 0 : index
    %13 = vector.load %arg8[%c0_13, %c0_14] : memref<16x1xf32, #tpu.memory_space<vmem>>, vector<16x1xf32>
    %14 = vector.broadcast %13 : vector<16x1xf32> to vector<16x64xf32>
    %15 = arith.addf %12, %14 : vector<16x64xf32>
    %cst_15 = arith.constant 0.000000e+00 : f32
    %16 = vector.broadcast %cst_15 : f32 to vector<16x64xf32>
    %17 = arith.maximumf %15, %16 : vector<16x64xf32>
    %c0_16 = arith.constant 0 : index
    %c0_17 = arith.constant 0 : index
    %18 = vector.load %arg9[%c0_16, %c0_17] : memref<64x256xf32, #tpu.memory_space<vmem>>, vector<64x256xf32>
    %cst_18 = arith.constant dense<0.000000e+00> : vector<16x256xf32>
    %19 = tpu.matmul %17, %18, %cst_18 {dimension_numbers = #tpu.dot_dimension_numbers<[1], [0], [0], [1], [0, 0, 1, 1], [], []>} : vector<16x64xf32>, vector<64x256xf32>, vector<16x256xf32> -> vector<16x256xf32>
    %20 = arith.addf %10, %19 : vector<16x256xf32>
    %c0_19 = arith.constant 0 : index
    %c0_20 = arith.constant 0 : index
    %c0_21 = arith.constant 0 : index
    %21 = vector.load %arg4[%c0_19, %c0_20, %c0_21] : memref<1x16x1xf32, #tpu.memory_space<vmem>>, vector<1x16x1xf32>
    %22 = vector.shape_cast %21 : vector<1x16x1xf32> to vector<16x1xf32>
    %23 = vector.broadcast %22 : vector<16x1xf32> to vector<16x256xf32>
    %24 = arith.addf %20, %23 : vector<16x256xf32>
    %c0_22 = arith.constant 0 : index
    %c0_23 = arith.constant 0 : index
    %c0_24 = arith.constant 0 : index
    %25 = vector.load %arg10[%c0_22, %c0_23, %c0_24] : memref<1x16x256xf32, #tpu.memory_space<vmem>>, vector<1x16x256xf32>
    %26 = vector.shape_cast %25 : vector<1x16x256xf32> to vector<16x256xf32>
    %27 = vector.shape_cast %24 : vector<16x256xf32> to vector<1x16x256xf32>
    tpu.vector_store %arg10[%c0_22, %c0_23, %c0_24], %27 {strides = array<i32>} : memref<1x16x256xf32, #tpu.memory_space<vmem>>, vector<1x16x256xf32>,
    return
  }
  func.func @transform_0(%arg0: i32, %arg1: i32) -> (i32, i32, i32) {
    %c0_i32 = arith.constant 0 : i32
    %c0_i32_0 = arith.constant 0 : i32
    return %arg0, %c0_i32, %arg1 : i32, i32, i32
  }
  func.func @transform_1(%arg0: i32, %arg1: i32) -> (i32, i32, i32) {
    %c0_i32 = arith.constant 0 : i32
    %c0_i32_0 = arith.constant 0 : i32
    return %arg0, %c0_i32, %arg1 : i32, i32, i32
  }
  func.func @transform_2(%arg0: i32, %arg1: i32) -> (i32, i32, i32) {
    %c0_i32 = arith.constant 0 : i32
    %c0_i32_0 = arith.constant 0 : i32
    %c0_i32_1 = arith.constant 0 : i32
    return %arg0, %c0_i32, %c0_i32_0 : i32, i32, i32
  }
  func.func @transform_3(%arg0: i32, %arg1: i32) -> (i32, i32) {
    %c0_i32 = arith.constant 0 : i32
    %c0_i32_0 = arith.constant 0 : i32
    %c0_i32_1 = arith.constant 0 : i32
    return %c0_i32, %c0_i32_0 : i32, i32
  }
  func.func @transform_4(%arg0: i32, %arg1: i32) -> (i32, i32) {
    %c0_i32 = arith.constant 0 : i32
    %c0_i32_0 = arith.constant 0 : i32
    %c0_i32_1 = arith.constant 0 : i32
    return %c0_i32, %c0_i32_0 : i32, i32
  }
  func.func @transform_5(%arg0: i32, %arg1: i32) -> (i32, i32) {
    %c0_i32 = arith.constant 0 : i32
    %c0_i32_0 = arith.constant 0 : i32
    %c0_i32_1 = arith.constant 0 : i32
    return %c0_i32, %c0_i32_0 : i32, i32
  }
  func.func @transform_6(%arg0: i32, %arg1: i32) -> (i32, i32) {
    %c0_i32 = arith.constant 0 : i32
    %c0_i32_0 = arith.constant 0 : i32
    %c0_i32_1 = arith.constant 0 : i32
    return %c0_i32, %c0_i32_0 : i32, i32
  }
  func.func @transform_7(%arg0: i32, %arg1: i32) -> (i32, i32) {
    %c0_i32 = arith.constant 0 : i32
    %c0_i32_0 = arith.constant 0 : i32
    %c0_i32_1 = arith.constant 0 : i32
    return %c0_i32, %c0_i32_0 : i32, i32
  }
  func.func @transform_8(%arg0: i32, %arg1: i32) -> (i32, i32, i32) {
    %c0_i32 = arith.constant 0 : i32
    %c0_i32_0 = arith.constant 0 : i32
    return %arg0, %c0_i32, %arg1 : i32, i32, i32
  }
}

</mosaic_0001>

<bundles_post_ra>
// kernel: tpu_custom_call.1
= control target key start
LH: loop header
LB: loop body
LE: loop exit
PB: predicated region body
PF: predicated region fallthrough
CT: control target
= control target key end

     0   :  { %13 = vsyncpa [#allocation3], 0  ;;  %s1369_s0 = inlined_call_operand.vmem [shape: f32[2,8,256], index: 0, kind: input, shape index: {}]   ;;  %s1370_s1 = inlined_call_operand.vmem [shape: f32[2,16,64], index: 1, kind: input, shape index: {}]   ;;  %s1371_s2 = inlined_call_operand.vmem [shape: f32[2,16,1], index: 2, kind: input, shape index: {}]   ;;  %s1372_s3 = inlined_call_operand.vmem [shape: f32[16,8], index: 3, kind: input, shape index: {}]   ;;  %s1373_s4 = inlined_call_operand.vmem [shape: f32[16,1], index: 4, kind: input, shape index: {}]   ;;  %s1374_s5 = inlined_call_operand.vmem [shape: f32[16,16], index: 5, kind: input, shape index: {}]   ;;  %s1375_s6 = inlined_call_operand.vmem [shape: f32[16,1], index: 6, kind: input, shape index: {}]   ;;  %s1376_s7 = inlined_call_operand.hbm [shape: f32[64,256], index: 7, kind: input, shape index: {}]   ;;  %s1377_s8 = inlined_call_operand.hbm [shape: f32[2,16,256], index: 8, kind: output, shape index: {}]  }
   0x1   :  { %14 = vsyncpa [#allocation4], 0 }
   0x2   :  { %16 = vsyncpa [#allocation4 + $0x1], 0  ;;  %s1165_s27 = smov 0   ;;  %s1167_s28 = smov 0  }
   0x3   :  { %s1169_s29 = smov 0   ;;  %s1171_s30 = smov 0  }
   0x4   :  { %s1173_s9 = smov 0   ;;  %s1175_s10 = smov 0  }
   0x5 LB: > { %s866_s11 = sadd.s32 4294967295, %s1110_s10   ;;  %s867_s12 = sadd.s32 4294967294, %s1110_s10   ;;  %s1110_s10 = sphi %s1175_s10, %s22_s10   ;;  %s1106_s9 = sphi %s1173_s9, %s1395_s9   ;;  %s1102_s30 = sphi %s1171_s30, %s1394_s30   ;;  %s1098_s29 = sphi %s1169_s29, %s1393_s29   ;;  %s1094_s28 = sphi %s1167_s28, %s1392_s28   ;;  %s1090_s27 = sphi %s1165_s27, %s1391_s27  }
   0x6   : > { %s34_s13 = sadd.s32 1, %s1106_s9  ;;  %s230_s14 = sadd.s32 1, %s1098_s29 }
   0x7   : > { %p36_p0 = scmp.ge.s32.totalorder %s34_s13, 2  ;;  %p240_p1 = scmp.ne.s32.totalorder %s1098_s29, %s1094_s28 }
   0x8   : > { %p241_p2 = scmp.eq.s32.totalorder %s866_s11, 1  ;;  %p246_p3 = scmp.ne.s32.totalorder %s1094_s28, %s1090_s27 }
   0x9   : > { %s1397_s13 = smov (%p36_p0, %s34_s13), 0  ;;  %p247_p5 = scmp.eq.s32.totalorder %s867_s12, 1 }
   0xa   : > { %p1205_p4 = por %p241_p2, %p240_p1  ;;  %s225_s16 = ssub.s32 %s1106_s9, %s1397_s13 }
   0xb   : > { %p868_p6 = scmp.ge.s32.totalorder %s1110_s10, 1  ;;  %p228_p7 = scmp.eq.s32.totalorder %s225_s16, 0 }
   0xc   : > { %s1382_s15 = scalar_select %p1205_p4, 1, 0 }
   0xd   : > { %p1212_p8 = por %p247_p5, %p246_p3  ;;  %p254_p9 = scmp.lt.s32.totalorder %s1110_s10, 3 }
   0xe   : > { %s1218_s18 = scalar_select %p228_p7, %s1098_s29, %s230_s14  }
   0xf   : > { %s1383_s17 = scalar_select %p1212_p8, 1, 0 }
  0x10   : > { %p1220_p10 = pnand %p868_p6, %p254_p9  ;;  %p1224_p11 = scmp.eq.s32.totalorder %s866_s11, 0 }
  0x11   : > { %s1112_s21 = smov [#allocation2]   ;;  %s1000_s26 = scalar_lea.hbm %s1376_s7, 2048 }
  0x12   : > { %s1384_s19 = scalar_select %p1220_p10, 1, 0 }
  0x13   : > { %s1385_s20 = scalar_select %p1224_p11, 1, 0 }
  0x14   : > { %p932_p12 = pneg %p1220_p10  ;;  %s278_s22 = sshll.u32 %s1112_s21, 4  ;;  %s279_s22 = int_to_ptr.vmem [resolvable:$true] %s278_s22 }
  0x15   : > { %p1001_p0 = scmp.ne.s32.totalorder %s1376_s7, %s1000_s26  ;;  %p1007_p5 = scmp.lt.u32.totalorder %s1000_s26, %s1376_s7 }
  0x16   : > { %p1232_p13 = pnand %p1224_p11, %p932_p12 }
  0x18   : > { %p1002_p1 = pneg %p1232_p13 }
  0x1a   : > { %p1003_p2 = pnand %p1002_p1, %p1001_p0 }
  0x1c   : > { %p1004_p3 = pneg %p1003_p2 }
  0x1e   : > { %p1009_p6 = pnand %p1007_p5, %p1004_p3 }
  0x20   : > { %1012 = shalt.err (!%p1009_p6)
}
  0x21   : > { %s1013_s21 = scalar_lea.vmem %s279_s22, 2048  ;;  %p1021_p8 = scmp.lt.s32.totalorder %s279_s22, %s279_s22 }
  0x22   : > { %p1014_p7 = scmp.ne.s32.totalorder %s279_s22, %s1013_s21  ;;  %p1022_p4 = scmp.lt.s32.totalorder %s1013_s21, %s1013_s21 }
  0x24   : > { %p1016_p9 = pnand %p1014_p7, %p1002_p1  ;;  %p1023_p11 = por %p1022_p4, %p1021_p8 }
  0x26   : > { %p1017_p12 = pneg %p1016_p9 }
  0x28   : > { %p1024_p10 = pnand %p1023_p11, %p1017_p12 }
  0x2a   : > { %1027 = shalt.err (!%p1024_p10)
}
  0x2b   : > { %s1113_s24 = smov 256   ;;  %s1114_s25 = smov 16  }
  0x2c   : > { %935 = dma.hbm_to_vmem [thread:$0]  (!%p1232_p13), %s1376_s7, 2048, %s279_s22, [#allocation3], %s1113_s24, %s1113_s24, %s1114_s25  }
  0x2d   : > { %p1387_p0 = scmp.ne.s32.totalorder %s1384_s19, 0 }
  0x2e   : > { %p1388_p2 = scmp.ne.s32.totalorder (!%p1387_p0), %s1385_s20, 0 }
  0x2f   : > { %326 = sbr.rel (%p1387_p0) target bundleno = 525 (0x20d), region = 52 }
  0x36   : > { %1081 = dma.done.wait (%p1388_p2), [#allocation3], 2048  }
  0x37   : > { %1083 = vsyncadd (%p1388_p2), [#allocation3], 4294965248  ;;  %p378_p4 = scmp.lt.s32.totalorder %s1102_s30, 1  ;;  %v1115_v0 = vmov 0.0   ;;  %v1116_v1 = vmov 0   ;;  %v405_v4 = vld [vmem:[%s1372_s3] sm:$0xff] }
  0x38   : > { %490 = vmatprep.mubr.f32.mxu1 %v1115_v0  ;;  %692 = vmatprep.mubr.f32.mxu0 %v1115_v0  ;;  %vm419_vm0 = vcmask 64512   ;;  %v407_v8 = vld [vmem:[%s1373_s4] sm:$0xff]  ;;  %v406_v9 = vld [vmem:[%s1372_s3 + $0x8] sm:$0xff]  ;;  %v608_v13 = vld [vmem:[#allocation2 + $0x18] sm:$0xff]  ;;  %vm521_vm1 = vcmask 130048   ;;  %vm621_vm2 = vcmask 523264  }
  0x39   : > { %s379_s23 = scalar_select %p378_p4, %s1102_s30, 1  ;;  %999 = vset.pattern.permute.xlu1 %v1116_v1  ;;  %998 = vset.pattern.permute.xlu0 %v1116_v1  ;;  %v509_v10 = vld [vmem:[%s1375_s6] sm:$0xff]  ;;  %v408_v11 = vld [vmem:[%s1373_s4 + $0x8] sm:$0xff]  ;;  %v607_v17 = vld [vmem:[#allocation2 + $0x10] sm:$0xff] }
  0x3a   : > { %411 = vperm.xlu1 %999, %v407_v8   ;;  %v606_v12 = vld [vmem:[#allocation2 + $0x8] sm:$0xff]  ;;  %v507_v14 = vld [vmem:[%s1374_s5] sm:$0xff]  ;;  %513 = vperm.xlu0 %998, %v509_v10   ;;  %v612_v23 = vld [vmem:[#allocation2 + $0x38] sm:$0xff]  ;;  %s894_s24 = sshll.u32 %s1102_s30, 9  ;;  %p1389_p10 = scmp.ne.s32.totalorder %s1382_s15, 0 }
  0x3b   : > { %s1262_s19 = sshll.u32 %s379_s23, 4  ;;  %v910_v15 = vpack.c.bf16 %v608_v13, %v606_v12  ;;  %v605_v16 = vld [vmem:[#allocation2] sm:$0xff]  ;;  %v510_v18 = vld [vmem:[%s1375_s6 + $0x8] sm:$0xff]  ;;  %v611_v26 = vld [vmem:[#allocation2 + $0x30] sm:$0xff]  ;;  %s1319_s12 = scalar_lea.hbm %s1377_s8, %s894_s24 }
  0x3c   : > { %s385_s20 = scalar_lea.vmem %s1369_s0, %s1262_s19  ;;  %s394_s21 = scalar_lea.vmem %s1370_s1, %s1262_s19  ;;  %v912_v19 = vpack.c.bf16 %v607_v17, %v605_v16  ;;  %v508_v20 = vld [vmem:[%s1374_s5 + $0x8] sm:$0xff]  ;;  %v609_v25 = vld [vmem:[#allocation2 + $0x20] sm:$0xff]  ;;  %v616_v29 = vld [vmem:[#allocation2 + $0x58] sm:$0xff] }
  0x3d   : > { %v402_v2 = vld [vmem:[%s385_s20 + $0x8] sm:$0xff]  ;;  %v401_v3 = vld [vmem:[%s385_s20] sm:$0xff]  ;;  %s1300_s22 = scalar_lea.vmem %s1371_s2, %s1262_s19  ;;  %911 = vmatprep.subr.bf16.mxu0 %v910_v15  ;;  %v916_v27 = vpack.c.bf16 %v611_v26, %v609_v25  ;;  %v615_v32 = vld [vmem:[#allocation2 + $0x50] sm:$0xff]  ;;  %s374_s19 = sand.u32 1, %s1094_s28  }
  0x3e   : > { %426 = vmatprep.subr.mxu1 %v402_v2  ;;  %v403_v5 = vld [vmem:[%s394_s21] sm:$0xff]  ;;  %v404_v6 = vld [vmem:[%s394_s21 + $0x8] sm:$0xff]  ;;  %416 = vperm.xlu1 %999, %v408_v11   ;;  %v620_v35 = vld [vmem:[#allocation2 + $0x78] sm:$0xff]  ;;  %s873_s14 = sshll.u32 %s374_s19, 5  ;;  %s1323_s30 = scalar_lea.sflag [#allocation4], %s374_s19 }
  0x3f   : > { %427 = vmatpush1.msra.mxu1 %v401_v3  ;;  %v906_v7 = vpack.c.bf16 %v404_v6, %v403_v5  ;;  %518 = vperm.xlu0 %998, %v510_v18   ;;  %v709_v21 = vld [vmem:[%s1300_s22] sm:$0xff]  ;;  %v610_v22 = vld [vmem:[#allocation2 + $0x28] sm:$0xff]  ;;  %v619_v38 = vld [vmem:[#allocation2 + $0x70] sm:$0xff]  ;;  %s376_s16 = scalar_lea.vmem [#allocation5], %s873_s14 }
  0x40   : > { %880 = vmatmul.mubr.msk.f32.vlgmr.msra.gmra.mrb[0].mxu1 %vm419_vm0, %v405_v4  ;;  %913 = vmatpush1.bf16.msra.mxu0 %v912_v19  ;;  %v914_v24 = vpack.c.bf16 %v612_v23, %v610_v22  ;;  %v614_v28 = vld [vmem:[#allocation2 + $0x48] sm:$0xff]  ;;  %v613_v31 = vld [vmem:[#allocation2 + $0x40] sm:$0xff]  ;;  %s745_s21 = sshll.u32 %s376_s16, 4  ;;  %s1314_s21 = int_to_ptr.vmem [resolvable:$true] %s745_s21 }
  0x41   : > { %907 = vmatprep.subr.bf16.mxu1 %v906_v7  ;;  %496 = vmatprep.mubr.f32.mxu1 %v1115_v0  ;;  %v918_v30 = vpack.c.bf16 %v616_v29, %v614_v28  ;;  %v920_v33 = vpack.c.bf16 %v615_v32, %v613_v31  ;;  %v618_v34 = vld [vmem:[#allocation2 + $0x68] sm:$0xff]  ;;  %v617_v37 = vld [vmem:[#allocation2 + $0x60] sm:$0xff]  ;;  %s1028_s23 = scalar_lea.vmem %s1314_s21, 512 }
  0x42   : > { %909 = vmatpush3.bf16.msra.mxu1 %v906_v7  ;;  %915 = vmatprep.subr.bf16.mxu0 %v914_v24  ;;  %v922_v36 = vpack.c.bf16 %v620_v35, %v618_v34  ;;  %v924_v39 = vpack.c.bf16 %v619_v38, %v617_v37  ;;  %v710_v40 = vld [vmem:[%s1300_s22 + $0x8] sm:$0xff]  ;;  %p1029_p8 = scmp.ne.s32.totalorder %s1314_s21, %s1028_s23  ;;  %s1117_s22 = smov [#allocation5]  }
  0x43   : > { %713 = vperm.xlu0 %998, %v709_v21   ;;  %718 = vperm.xlu1 %999, %v710_v40   ;;  %s1032_s26 = sshll.u32 %s1117_s22, 4  ;;  %s1033_s26 = int_to_ptr.vmem [resolvable:$false] %s1032_s26 }
  0x44   : > { %881 = vmatmul.mubr.msk.f32.gmra.mrb[2].mxu1 %vm419_vm0, %v406_v9  ;;  %917 = vmatpush1.bf16.msra.mxu0 %v916_v27  ;;  %p1030_p11 = pnand %p1029_p8, %p1389_p10  ;;  %s1034_s20 = scalar_lea.vmem %s1033_s26, 1024 }
  0x45   : > { %903 = vmatprep.mubr.msk.f32.mxu1 %vm521_vm1, %v507_v14  ;;  %919 = vmatprep.subr.bf16.mxu0 %v918_v30  ;;  %p1035_p1 = scmp.lt.s32.totalorder %s1314_s21, %s1033_s26  ;;  %p1036_p3 = scmp.lt.s32.totalorder %s1034_s20, %s1028_s23 }
  0x46   : > { %p1031_p13 = pneg %p1030_p11 }
  0x47   : > { %p1037_p5 = por %p1036_p3, %p1035_p1 }
  0x48   : > { %904 = vmatmul.mubr.msk.f32.vlgmr.msra.gmra.mrb[4].mxu1 %vm521_vm1, %v508_v20  ;;  %921 = vmatpush1.bf16.msra.mxu0 %v920_v33 }
  0x49   : > { %923 = vmatprep.subr.bf16.mxu0 %v922_v36  ;;  %p1038_p6 = pnand %p1037_p5, %p1031_p13 }
  0x4c   : > { %925 = vmatpush1.bf16.msra.mxu0 %v924_v39 }
  0xb9   : > { %v514_v44 = vpop.permute.xlu0 %513  ;;  %v412_v53 = vpop.permute.xlu1 %411 }
  0xbd   : > { %v417_v56 = vpop.permute.xlu1 %416 }
  0xbe   : > { %v519_v49 = vpop.permute.xlu0 %518 }
  0xc2   : > { %v714_v1 = vpop.permute.xlu0 %713  ;;  %v719_v9 = vpop.permute.xlu1 %718 }
 0x113   : > { %v492_v41 = vpop.f32.mrb[0].mxu1 }
 0x114   : > { %v494_v42 = vpop.f32.mrb[1].mxu1  ;;  %v493_v54 = vadd.f32 %v492_v41, %v412_v53 }
 0x115   : > { %v495_v55 = vadd.f32 %v494_v42, %v412_v53 }
 0x116   : > { %v503_v57 = vmax.f32 %v493_v54, 0.0 }
 0x117   : > { %v498_v43 = vpop.f32.mrb[2].mxu1  ;;  %v504_v59 = vmax.f32 %v495_v55, 0.0 }
 0x118   : > { %v500_v45 = vpop.f32.mrb[3].mxu1  ;;  %v499_v58 = vadd.f32 %v498_v43, %v417_v56 }
 0x119   : > { %v501_v60 = vadd.f32 %v500_v45, %v417_v56 }
 0x11b   : > { %v905_v46 = vpop.f32.mrb[4].mxu1  ;;  %v506_v4 = vmax.f32 %v501_v60, 0.0 }
 0x11c   : > { %v594_v47 = vpop.f32.mrb[5].mxu1  ;;  %v600_v50 = vadd.f32 %v905_v46, %v519_v49 }
 0x11d   : > { %v595_v48 = vadd.f32 %v594_v47, %v514_v44 }
 0x11e   : > { %v604_v52 = vmax.f32 %v600_v50, 0.0 }
 0x11f   : > { %v603_v51 = vmax.f32 %v595_v48, 0.0 }
 0x121   : > { %884 = vmatmul.mubr.msk.f32.vlgmr.msra.gmra.mrb[0].mxu0 %vm621_vm2, %v603_v51 }
 0x122   : > { %698 = vmatprep.mubr.f32.mxu0 %v1115_v0  ;;  %v505_v0 = vmax.f32 %v499_v58, 0.0 }
 0x125   : > { %885 = vmatmul.mubr.msk.f32.gmra.mrb[2].mxu0 %vm621_vm2, %v604_v52 }
 0x1f4   : > { %v694_v61 = vpop.f32.mrb[0].mxu0 }
 0x1f5   : > { %v705_v62 = vadd.f32 %v694_v61, %v503_v57  ;;  %v696_v63 = vpop.f32.mrb[1].mxu0 }
 0x1f6   : > { %v706_v2 = vadd.f32 %v696_v63, %v504_v59 }
 0x1f7   : > { %v721_v3 = vadd.f32 %v714_v1, %v705_v62 }
 0x1f8   : > { %v722_v5 = vadd.f32 %v714_v1, %v706_v2  ;;  %v700_v6 = vpop.f32.mrb[2].mxu0 }
 0x1f9   : > { %725 = vst [vmem:[%s376_s16] sm:$0xff] %v721_v3  ;;  %v707_v7 = vadd.f32 %v700_v6, %v505_v0  ;;  %v702_v8 = vpop.f32.mrb[3].mxu0 }
 0x1fa   : > { %726 = vst [vmem:[%s376_s16 + $0x8] sm:$0xff] %v722_v5  ;;  %v708_v10 = vadd.f32 %v702_v8, %v506_v4 }
 0x1fb   : > { %v723_v11 = vadd.f32 %v719_v9, %v707_v7 }
 0x1fc   : > { %v724_v12 = vadd.f32 %v719_v9, %v708_v10 }
 0x1fd   : > { %727 = vst [vmem:[%s376_s16 + $0x10] sm:$0xff] %v723_v11 }
 0x1fe   : > { %728 = vst [vmem:[%s376_s16 + $0x18] sm:$0xff] %v724_v12 }
 0x1ff   : > { %1041 = shalt.err (!%p1038_p6)
}
 0x200   : > { %s1042_s19 = scalar_lea.hbm %s1319_s12, 512  ;;  %s1046_s24 = scalar_lea.hbm %s1377_s8, 1024 }
 0x201   : > { %p1043_p7 = scmp.ne.s32.totalorder %s1319_s12, %s1042_s19  ;;  %p1047_p0 = scmp.lt.u32.totalorder %s1319_s12, %s1377_s8 }
 0x202   : > { %p1048_p2 = scmp.lt.u32.totalorder %s1046_s24, %s1042_s19  ;;  %p1050_p8 = scmp.lt.u32.totalorder %s1042_s19, %s1319_s12 }
 0x203   : > { %p1044_p9 = pnand %p1043_p7, %p1389_p10 }
 0x204   : > { %p1049_p4 = por %p1048_p2, %p1047_p0 }
 0x205   : > { %p1045_p12 = pneg %p1044_p9 }
 0x206   : > { %p1051_p11 = por %p1050_p8, %p1049_p4 }
 0x208   : > { %p1052_p13 = pnand %p1051_p11, %p1045_p12 }
 0x20a   : > { %1055 = shalt.err (!%p1052_p13)
}
 0x20b   : > { %s1118_s23 = smov 256   ;;  %s1119_s22 = smov 16  }
 0x20c   : > { %930 = dma.vmem_to_hbm [thread:$0]  (%p1389_p10), %s1314_s21, 512, %s1319_s12, %s1323_s30, %s1118_s23, %s1118_s23, %s1119_s22  }
 0x20d PF: > { %p942_p1 = scmp.ge.s32.totalorder %s1110_s10, 2  ;;  %s760_s26 = sand.u32 1, %s1090_s27  }
 0x20e   : > { %p1390_p3 = scmp.ne.s32.totalorder %s1383_s17, 0  ;;  %s761_s20 = scalar_lea.sflag [#allocation4], %s760_s26 }
 0x210   : > { %p937_p5 = pnand %p942_p1, %p1390_p3 }
 0x212   : > { %1085 = dma.done.wait (!%p937_p5), %s761_s20, 512  }
 0x213   : > { %1087 = vsyncadd (!%p937_p5), %s761_s20, 4294966784  ;;  %s22_s10 = sadd.s32 1, %s1110_s10   ;;  %s1391_s27 = smov %s1094_s28 }
 0x214   : > { %p19_p6 = scmp.ge.s32.totalorder %s22_s10, 4   ;;  %s1392_s28 = smov %s1098_s29 }
 0x215   : > { %s1393_s29 = smov %s1218_s18  ;;  %s1394_s30 = smov %s1106_s9 }
 0x216   : > { %s1395_s9 = smov %s1397_s13  ;;  %21 = sbr.rel (!%p19_p6) target bundleno = 5 (0x5), region = 98 }
 0x21d   :  { %766 = vsyncpa [#allocation3], 1 }
 0x21e   :  { %768 = vsyncpa [#allocation3 + $0x1], 1 }
 0x21f   :  { %769 = vsyncpa [#allocation4], 1 }
 0x220   :  { %771 = vsyncpa [#allocation4 + $0x1], 1 }

</bundles_post_ra>
